<compile_context>
chip_gen: v6e
topology: v6e:2x2x1
jax: 0.10.0
libtpu: 0.0.40
codegen_flags: <defaults>
</compile_context>

<pallas_src>
import functools

import jax
import jax.numpy as jnp
from jax import lax
from jax.experimental import pallas as pl
from jax.experimental.pallas import tpu as pltpu


def _layer_norm(x, gamma, beta, eps=1e-5):
    mu = jnp.mean(x, axis=-1, keepdims=True)
    var = jnp.mean((x - mu) ** 2, axis=-1, keepdims=True)
    return (x - mu) * lax.rsqrt(var + eps) * gamma + beta


def encoder_layer_kernel(n_head, d_k, d_v, compute_dtype,
                         x_ref, npm_ref, mask_ref,
                         wqkv_ref, bqkv_ref, wo_ref, bo_ref,
                         g1_ref, be1_ref, w1_ref, b1_ref, w2_ref, b2_ref,
                         g2_ref, be2_ref,
                         out_ref, attn_ref):
    H, dk, dv = n_head, d_k, d_v
    x = x_ref[0]                                   # (L, D)  f32
    npm = npm_ref[0]                               # (L, 1)  non-pad mask (1.0 = keep)
    # additive attention-mask bias, computed once for all heads (finite, not -inf)
    neg_bias = jnp.where(mask_ref[0] != 0, -1e30, 0.0)   # (L, L)

    xc = x.astype(compute_dtype)

    # --- fused QKV projection: one MXU matmul --------------------------------
    qkv = jnp.dot(xc, wqkv_ref[...],
                  preferred_element_type=jnp.float32) + bqkv_ref[0]
    scale = 1.0 / (float(dk) ** 0.5)
    q = qkv[:, :H * dk] * scale                    # fold 1/sqrt(d_k) into q
    k = qkv[:, H * dk:2 * H * dk]
    v = qkv[:, 2 * H * dk:]

    # heads -> leading (batch) axis: (H, L, dk/dv)  (one-time layout shuffle)
    q3 = jnp.stack([q[:, h * dk:(h + 1) * dk] for h in range(H)], axis=0)
    k3 = jnp.stack([k[:, h * dk:(h + 1) * dk] for h in range(H)], axis=0)
    v3 = jnp.stack([v[:, h * dv:(h + 1) * dv] for h in range(H)], axis=0)

    # --- head-batched scores + softmax ---------------------------------------
    s = lax.dot_general(q3.astype(compute_dtype), k3.astype(compute_dtype),
                        (((2,), (2,)), ((0,), (0,))),
                        preferred_element_type=jnp.float32)        # (H, L, L)
    s = s + neg_bias[None, :, :]
    s_max = jnp.max(s, axis=-1, keepdims=True)
    p = jnp.exp(s - s_max)
    denom = jnp.sum(p, axis=-1, keepdims=True)
    attn = p * pl.reciprocal(denom, approx=True)                   # (H, L, L)
    attn_ref[:, 0] = attn.astype(attn_ref.dtype)

    # --- head-batched attn @ V, then fused output projection -----------------
    ctx3 = lax.dot_general(attn.astype(compute_dtype), v3.astype(compute_dtype),
                           (((2,), (1,)), ((0,), (0,))),
                           preferred_element_type=jnp.float32)     # (H, L, dv)
    ctx = jnp.concatenate([ctx3[h] for h in range(H)], axis=-1)    # (L, H*dv)

    o = jnp.dot(ctx.astype(compute_dtype), wo_ref[...],
                preferred_element_type=jnp.float32) + bo_ref[0]
    # TODO(synk): dropout omitted (eval mode -> identity)
    o = _layer_norm(o + x, g1_ref[0], be1_ref[0])
    o = o * npm                                    # enc_output *= non_pad_mask

    # --- position-wise feed-forward (Conv1d kernel_size=1 == matmul) ---------
    h1 = jnp.maximum(
        jnp.dot(o.astype(compute_dtype), w1_ref[...],
                preferred_element_type=jnp.float32) + b1_ref[0], 0.0)
    f = jnp.dot(h1.astype(compute_dtype), w2_ref[...],
                preferred_element_type=jnp.float32) + b2_ref[0]
    f = _layer_norm(f + o, g2_ref[0], be2_ref[0])
    out_ref[0] = (f * npm).astype(out_ref.dtype)   # enc_output *= non_pad_mask


def encoder_layer(enc_input, non_pad_mask, slf_attn_mask, params,
                  n_head, d_k, d_v,
                  compute_dtype=jnp.bfloat16, attn_dtype=jnp.float32):
    B, L, D = enc_input.shape
    d_inner = params['w1'].shape[1]

    # fuse Q/K/V weights & biases into one projection (free, wrapper level)
    wqkv = jnp.concatenate([params['wq'], params['wk'], params['wv']], axis=1)
    bqkv = jnp.concatenate([params['bq'], params['bk'], params['bv']], axis=1)

    # matmul weights in compute_dtype (f32 accumulation in-kernel);
    # biases / layer-norm params stay f32.
    mm = lambda w: w.astype(compute_dtype)
    param_list = [mm(wqkv), bqkv, mm(params['wo']), params['bo'],
                  params['g1'], params['be1'],
                  mm(params['w1']), params['b1'],
                  mm(params['w2']), params['b2'],
                  params['g2'], params['be2']]

    def full_spec(arr):
        nd = arr.ndim
        return pl.BlockSpec(arr.shape, lambda b, nd=nd: (0,) * nd)

    kernel = functools.partial(encoder_layer_kernel, n_head, d_k, d_v,
                               compute_dtype)

    itemsz = lambda dt: jnp.dtype(dt).itemsize
    param_bytes = sum(int(p.size) * itemsz(p.dtype) for p in param_list)
    block_bytes = (2 * (L * D * 4 + L * 4 + L * L * 4              # x, npm, mask
                        + L * D * 4                                # out
                        + n_head * L * L * itemsz(attn_dtype))     # attn
                   + param_bytes)
    # Respect the actual chip's VMEM (v7x: 64 MiB/TC); leave headroom.
    try:
        vmem_cap = int(pltpu.get_tpu_info().vmem_capacity_bytes)
    except Exception:
        vmem_cap = 64 * 2**20
    vmem_limit = int(min(vmem_cap - 16 * 2**20,
                         max(32 * 2**20, 6 * block_bytes)))
    vmem_limit = max(vmem_limit, 32 * 2**20)

    # Advisory cost hint for the XLA scheduler around the custom call.
    flops = 2 * B * L * (
        D * (2 * n_head * d_k + n_head * d_v)      # QKV projection
        + n_head * L * d_k + n_head * L * d_v      # scores + attn @ V
        + n_head * d_v * D                         # output projection
        + D * d_inner + d_inner * D)               # FFN
    transcendentals = B * n_head * L * L + B * n_head * L + 4 * B * L
    bytes_accessed = (B * L * D * 4 * 2 + B * L * 4 + B * L * L * 4
                      + n_head * B * L * L * itemsz(attn_dtype) + param_bytes)
    cost = pl.CostEstimate(flops=int(flops),
                           transcendentals=int(transcendentals),
                           bytes_accessed=int(bytes_accessed))

    out, attn = pl.pallas_call(
        kernel,
        out_shape=(jax.ShapeDtypeStruct((B, L, D), jnp.float32),
                   jax.ShapeDtypeStruct((n_head, B, L, L), attn_dtype)),
        grid=(B,),
        in_specs=[
            pl.BlockSpec((1, L, D), lambda b: (b, 0, 0)),   # enc_input
            pl.BlockSpec((1, L, 1), lambda b: (b, 0, 0)),   # non_pad_mask
            pl.BlockSpec((1, L, L), lambda b: (b, 0, 0)),   # slf_attn_mask
        ] + [full_spec(p) for p in param_list],
        out_specs=(pl.BlockSpec((1, L, D), lambda b: (b, 0, 0)),
                   pl.BlockSpec((n_head, 1, L, L), lambda b: (0, b, 0, 0))),
        compiler_params=pltpu.CompilerParams(
            dimension_semantics=("parallel",),
            vmem_limit_bytes=vmem_limit),
        cost_estimate=cost,
    )(enc_input, non_pad_mask, slf_attn_mask, *param_list)

    # TODO(synk): for very long L on v7x (64 MiB VMEM) add a query-tile grid axis;
    # current blocking holds the full (L, L) scores per batch step.
    # match PyTorch MultiHeadAttention: attn is (n_head * B, L, L), head-major
    return out, attn.reshape(n_head * B, L, L)


def reference(enc_input, non_pad_mask, slf_attn_mask, p, n_head, d_k, d_v):
    """Pure-JAX reference mirroring the PyTorch forward (eval mode)."""
    hp = lax.Precision.HIGHEST
    B, L, D = enc_input.shape
    x = enc_input
    q = jnp.einsum('bld,de->ble', x, p['wq'], precision=hp) + p['bq'][0]
    k = jnp.einsum('bld,de->ble', x, p['wk'], precision=hp) + p['bk'][0]
    v = jnp.einsum('bld,de->ble', x, p['wv'], precision=hp) + p['bv'][0]
    qh = q.reshape(B, L, n_head, d_k).transpose(2, 0, 1, 3)
    kh = k.reshape(B, L, n_head, d_k).transpose(2, 0, 1, 3)
    vh = v.reshape(B, L, n_head, d_v).transpose(2, 0, 1, 3)
    s = jnp.einsum('hbqd,hbkd->hbqk', qh, kh, precision=hp) / (d_k ** 0.5)
    s = jnp.where(slf_attn_mask[None] != 0, -jnp.inf, s)
    s_max = jnp.max(s, axis=-1, keepdims=True)
    e = jnp.exp(s - s_max)
    attn = e / jnp.sum(e, axis=-1, keepdims=True)          # (n_head, B, L, L)
    oh = jnp.einsum('hbqk,hbkd->hbqd', attn, vh, precision=hp)
    o = oh.transpose(1, 2, 0, 3).reshape(B, L, n_head * d_v)
    o = jnp.einsum('bld,de->ble', o, p['wo'], precision=hp) + p['bo'][0]
    o = _layer_norm(o + x, p['g1'][0], p['be1'][0])
    o = o * non_pad_mask
    h1 = jnp.maximum(
        jnp.einsum('bld,de->ble', o, p['w1'], precision=hp) + p['b1'][0], 0.0)
    f = jnp.einsum('bld,de->ble', h1, p['w2'], precision=hp) + p['b2'][0]
    f = _layer_norm(f + o, p['g2'][0], p['be2'][0])
    f = f * non_pad_mask
    return f, attn.reshape(n_head * B, L, L)


if __name__ == "__main__":
    # small config consistent with the module
    B, L = 2, 8
    d_model, d_inner = 32, 64
    n_head, d_k, d_v = 4, 8, 8

    key = jax.random.PRNGKey(0)
    keys = jax.random.split(key, 12)

    enc_input = jax.random.normal(keys[0], (B, L, d_model), jnp.float32)

    # per-batch valid lengths -> non_pad_mask (B, L, 1) and key-pad slf_attn_mask (B, L, L)
    lengths = jnp.array([8, 6], dtype=jnp.int32)
    pos = jnp.arange(L)
    non_pad_mask = (pos[None, :] < lengths[:, None]).astype(jnp.float32)[..., None]
    slf_attn_mask = (pos[None, None, :] >= lengths[:, None, None])
    slf_attn_mask = jnp.broadcast_to(slf_attn_mask, (B, L, L)).astype(jnp.float32)

    def init(k, shape, scale=0.1):
        return scale * jax.random.normal(k, shape, jnp.float32)

    params = {
        'wq': init(keys[1], (d_model, n_head * d_k)),
        'bq': init(keys[2], (1, n_head * d_k)),
        'wk': init(keys[3], (d_model, n_head * d_k)),
        'bk': init(keys[4], (1, n_head * d_k)),
        'wv': init(keys[5], (d_model, n_head * d_v)),
        'bv': init(keys[6], (1, n_head * d_v)),
        'wo': init(keys[7], (n_head * d_v, d_model)),
        'bo': init(keys[8], (1, d_model)),
        'g1': jnp.ones((1, d_model), jnp.float32),
        'be1': jnp.zeros((1, d_model), jnp.float32),
        'w1': init(keys[9], (d_model, d_inner)),
        'b1': init(keys[10], (1, d_inner)),
        'w2': init(keys[11], (d_inner, d_model)),
        'b2': jnp.zeros((1, d_model), jnp.float32),
        'g2': jnp.ones((1, d_model), jnp.float32),
        'be2': jnp.zeros((1, d_model), jnp.float32),
    }

    ref_out, ref_attn = reference(
        enc_input, non_pad_mask, slf_attn_mask, params, n_head, d_k, d_v)

    # 1) f32 path: strict check against the Precision.HIGHEST reference
    out32, attn32 = encoder_layer(
        enc_input, non_pad_mask, slf_attn_mask, params, n_head, d_k, d_v,
        compute_dtype=jnp.float32, attn_dtype=jnp.float32)
    jax.block_until_ready((out32, attn32))
    assert jnp.allclose(out32, ref_out, atol=5e-3, rtol=5e-3), "f32 output mismatch"
    assert jnp.allclose(attn32, ref_attn, atol=5e-3, rtol=5e-3), "f32 attn mismatch"

    # 2) bf16 fast path (bf16 MXU operands, f32 accumulation, bf16 attn writeback):
    #    wider tolerance vs. the HIGHEST-precision f32 reference.
    out16, attn16 = encoder_layer(
        enc_input, non_pad_mask, slf_attn_mask, params, n_head, d_k, d_v,
        compute_dtype=jnp.bfloat16, attn_dtype=jnp.bfloat16)
    jax.block_until_ready((out16, attn16))
    assert jnp.allclose(out16, ref_out, atol=5e-2, rtol=5e-2), "bf16 output mismatch"
    assert jnp.allclose(attn16.astype(jnp.float32), ref_attn,
                        atol=5e-2, rtol=5e-2), "bf16 attn mismatch"

    print("KERNEL_OK")
</pallas_src>

<mosaic_0001>
module attributes {stable_mosaic.version = 11 : i64} {
  func.func @encoder_layer_kernel(%arg0: i32, %arg1: memref<1x8x32xf32, #tpu.memory_space<vmem>>, %arg2: memref<1x8x1xf32, #tpu.memory_space<vmem>>, %arg3: memref<1x8x8xf32, #tpu.memory_space<vmem>>, %arg4: memref<32x96xf32, #tpu.memory_space<vmem>>, %arg5: memref<1x96xf32, #tpu.memory_space<vmem>>, %arg6: memref<32x32xf32, #tpu.memory_space<vmem>>, %arg7: memref<1x32xf32, #tpu.memory_space<vmem>>, %arg8: memref<1x32xf32, #tpu.memory_space<vmem>>, %arg9: memref<1x32xf32, #tpu.memory_space<vmem>>, %arg10: memref<32x64xf32, #tpu.memory_space<vmem>>, %arg11: memref<1x64xf32, #tpu.memory_space<vmem>>, %arg12: memref<64x32xf32, #tpu.memory_space<vmem>>, %arg13: memref<1x32xf32, #tpu.memory_space<vmem>>, %arg14: memref<1x32xf32, #tpu.memory_space<vmem>>, %arg15: memref<1x32xf32, #tpu.memory_space<vmem>>, %arg16: memref<1x8x32xf32, #tpu.memory_space<vmem>>, %arg17: memref<4x1x8x8xf32, #tpu.memory_space<vmem>>) attributes {dimension_semantics = [#tpu.dimension_semantics<parallel>], iteration_bounds = array<i64: 2>, scalar_prefetch = 0 : i64, scratch_operands = 0 : i64, tpu.core_type = #tpu.core_type<tc>, window_params = [{transform_indices = @transform_0, window_bounds = array<i64: 1, 8, 32>}, {transform_indices = @transform_1, window_bounds = array<i64: 1, 8, 1>}, {transform_indices = @transform_2, window_bounds = array<i64: 1, 8, 8>}, {pipeline_mode = #tpu.pipeline_mode<synchronous>, transform_indices = @transform_3, window_bounds = array<i64: 32, 96>}, {pipeline_mode = #tpu.pipeline_mode<synchronous>, transform_indices = @transform_4, window_bounds = array<i64: 1, 96>}, {pipeline_mode = #tpu.pipeline_mode<synchronous>, transform_indices = @transform_5, window_bounds = array<i64: 32, 32>}, {pipeline_mode = #tpu.pipeline_mode<synchronous>, transform_indices = @transform_6, window_bounds = array<i64: 1, 32>}, {pipeline_mode = #tpu.pipeline_mode<synchronous>, transform_indices = @transform_7, window_bounds = array<i64: 1, 32>}, {pipeline_mode = #tpu.pipeline_mode<synchronous>, transform_indices = @transform_8, window_bounds = array<i64: 1, 32>}, {pipeline_mode = #tpu.pipeline_mode<synchronous>, transform_indices = @transform_9, window_bounds = array<i64: 32, 64>}, {pipeline_mode = #tpu.pipeline_mode<synchronous>, transform_indices = @transform_10, window_bounds = array<i64: 1, 64>}, {pipeline_mode = #tpu.pipeline_mode<synchronous>, transform_indices = @transform_11, window_bounds = array<i64: 64, 32>}, {pipeline_mode = #tpu.pipeline_mode<synchronous>, transform_indices = @transform_12, window_bounds = array<i64: 1, 32>}, {pipeline_mode = #tpu.pipeline_mode<synchronous>, transform_indices = @transform_13, window_bounds = array<i64: 1, 32>}, {pipeline_mode = #tpu.pipeline_mode<synchronous>, transform_indices = @transform_14, window_bounds = array<i64: 1, 32>}, {transform_indices = @transform_15, window_bounds = array<i64: 1, 8, 32>}, {transform_indices = @transform_16, window_bounds = array<i64: 4, 1, 8, 8>}]} {
    %c0 = arith.constant 0 : index
    %c0_0 = arith.constant 0 : index
    %c0_1 = arith.constant 0 : index
    %0 = vector.load %arg1[%c0, %c0_0, %c0_1] : memref<1x8x32xf32, #tpu.memory_space<vmem>>, vector<1x8x32xf32>
    %1 = vector.shape_cast %0 : vector<1x8x32xf32> to vector<8x32xf32>
    %c0_2 = arith.constant 0 : index
    %c0_3 = arith.constant 0 : index
    %c0_4 = arith.constant 0 : index
    %2 = vector.load %arg2[%c0_2, %c0_3, %c0_4] : memref<1x8x1xf32, #tpu.memory_space<vmem>>, vector<1x8x1xf32>
    %3 = vector.shape_cast %2 : vector<1x8x1xf32> to vector<8x1xf32>
    %c0_5 = arith.constant 0 : index
    %c0_6 = arith.constant 0 : index
    %c0_7 = arith.constant 0 : index
    %4 = vector.load %arg3[%c0_5, %c0_6, %c0_7] : memref<1x8x8xf32, #tpu.memory_space<vmem>>, vector<1x8x8xf32>
    %5 = vector.shape_cast %4 : vector<1x8x8xf32> to vector<8x8xf32>
    %cst = arith.constant 0.000000e+00 : f32
    %6 = vector.broadcast %cst : f32 to vector<8x8xf32>
    %7 = arith.cmpf one, %5, %6 : vector<8x8xf32>
    %cst_8 = arith.constant -1.000000e+30 : f32
    %cst_9 = arith.constant 0.000000e+00 : f32
    %8 = vector.broadcast %cst_8 : f32 to vector<8x8xf32>
    %9 = vector.broadcast %cst_9 : f32 to vector<8x8xf32>
    %10 = arith.select %7, %8, %9 : vector<8x8xi1>, vector<8x8xf32>
    %c0_10 = arith.constant 0 : index
    %c0_11 = arith.constant 0 : index
    %11 = vector.load %arg4[%c0_10, %c0_11] : memref<32x96xf32, #tpu.memory_space<vmem>>, vector<32x96xf32>
    %cst_12 = arith.constant dense<0.000000e+00> : vector<8x96xf32>
    %12 = tpu.matmul %1, %11, %cst_12 {dimension_numbers = #tpu.dot_dimension_numbers<[1], [0], [0], [1], [0, 0, 1, 1], [], []>} : vector<8x32xf32>, vector<32x96xf32>, vector<8x96xf32> -> vector<8x96xf32>
    %c0_13 = arith.constant 0 : index
    %c0_14 = arith.constant 0 : index
    %13 = vector.load %arg5[%c0_13, %c0_14] : memref<1x96xf32, #tpu.memory_space<vmem>>, vector<1x96xf32>
    %14 = vector.shape_cast %13 : vector<1x96xf32> to vector<96xf32>
    %15 = vector.shape_cast %14 : vector<96xf32> to vector<1x96xf32>
    %16 = vector.broadcast %15 : vector<1x96xf32> to vector<8x96xf32>
    %17 = arith.addf %12, %16 : vector<8x96xf32>
    %18 = vector.extract_strided_slice %17 {offsets = [0, 0], sizes = [8, 32], strides = [1, 1]} : vector<8x96xf32> to vector<8x32xf32>
    %cst_15 = arith.constant 0.353553385 : f32
    %19 = vector.broadcast %cst_15 : f32 to vector<8x32xf32>
    %20 = arith.mulf %18, %19 : vector<8x32xf32>
    %21 = vector.extract_strided_slice %17 {offsets = [0, 32], sizes = [8, 32], strides = [1, 1]} : vector<8x96xf32> to vector<8x32xf32>
    %22 = vector.extract_strided_slice %17 {offsets = [0, 64], sizes = [8, 32], strides = [1, 1]} : vector<8x96xf32> to vector<8x32xf32>
    %23 = vector.extract_strided_slice %20 {offsets = [0, 0], sizes = [8, 8], strides = [1, 1]} : vector<8x32xf32> to vector<8x8xf32>
    %24 = vector.extract_strided_slice %20 {offsets = [0, 8], sizes = [8, 8], strides = [1, 1]} : vector<8x32xf32> to vector<8x8xf32>
    %25 = vector.extract_strided_slice %20 {offsets = [0, 16], sizes = [8, 8], strides = [1, 1]} : vector<8x32xf32> to vector<8x8xf32>
    %26 = vector.extract_strided_slice %20 {offsets = [0, 24], sizes = [8, 8], strides = [1, 1]} : vector<8x32xf32> to vector<8x8xf32>
    %27 = vector.shape_cast %23 : vector<8x8xf32> to vector<1x8x8xf32>
    %28 = vector.shape_cast %24 : vector<8x8xf32> to vector<1x8x8xf32>
    %29 = vector.shape_cast %25 : vector<8x8xf32> to vector<1x8x8xf32>
    %30 = vector.shape_cast %26 : vector<8x8xf32> to vector<1x8x8xf32>
    %31 = tpu.concatenate %27, %28, %29, %30 in 0 : vector<1x8x8xf32>, vector<1x8x8xf32>, vector<1x8x8xf32>, vector<1x8x8xf32> -> vector<4x8x8xf32>
    %32 = vector.extract_strided_slice %21 {offsets = [0, 0], sizes = [8, 8], strides = [1, 1]} : vector<8x32xf32> to vector<8x8xf32>
    %33 = vector.extract_strided_slice %21 {offsets = [0, 8], sizes = [8, 8], strides = [1, 1]} : vector<8x32xf32> to vector<8x8xf32>
    %34 = vector.extract_strided_slice %21 {offsets = [0, 16], sizes = [8, 8], strides = [1, 1]} : vector<8x32xf32> to vector<8x8xf32>
    %35 = vector.extract_strided_slice %21 {offsets = [0, 24], sizes = [8, 8], strides = [1, 1]} : vector<8x32xf32> to vector<8x8xf32>
    %36 = vector.shape_cast %32 : vector<8x8xf32> to vector<1x8x8xf32>
    %37 = vector.shape_cast %33 : vector<8x8xf32> to vector<1x8x8xf32>
    %38 = vector.shape_cast %34 : vector<8x8xf32> to vector<1x8x8xf32>
    %39 = vector.shape_cast %35 : vector<8x8xf32> to vector<1x8x8xf32>
    %40 = tpu.concatenate %36, %37, %38, %39 in 0 : vector<1x8x8xf32>, vector<1x8x8xf32>, vector<1x8x8xf32>, vector<1x8x8xf32> -> vector<4x8x8xf32>
    %41 = vector.extract_strided_slice %22 {offsets = [0, 0], sizes = [8, 8], strides = [1, 1]} : vector<8x32xf32> to vector<8x8xf32>
    %42 = vector.extract_strided_slice %22 {offsets = [0, 8], sizes = [8, 8], strides = [1, 1]} : vector<8x32xf32> to vector<8x8xf32>
    %43 = vector.extract_strided_slice %22 {offsets = [0, 16], sizes = [8, 8], strides = [1, 1]} : vector<8x32xf32> to vector<8x8xf32>
    %44 = vector.extract_strided_slice %22 {offsets = [0, 24], sizes = [8, 8], strides = [1, 1]} : vector<8x32xf32> to vector<8x8xf32>
    %45 = vector.shape_cast %41 : vector<8x8xf32> to vector<1x8x8xf32>
    %46 = vector.shape_cast %42 : vector<8x8xf32> to vector<1x8x8xf32>
    %47 = vector.shape_cast %43 : vector<8x8xf32> to vector<1x8x8xf32>
    %48 = vector.shape_cast %44 : vector<8x8xf32> to vector<1x8x8xf32>
    %49 = tpu.concatenate %45, %46, %47, %48 in 0 : vector<1x8x8xf32>, vector<1x8x8xf32>, vector<1x8x8xf32>, vector<1x8x8xf32> -> vector<4x8x8xf32>
    %cst_16 = arith.constant dense<0.000000e+00> : vector<4x8x8xf32>
    %50 = tpu.matmul %31, %40, %cst_16 {dimension_numbers = #tpu.dot_dimension_numbers<[2], [2], [1], [1], [0, 0, 0, 1, 1, 1], [0], [0]>} : vector<4x8x8xf32>, vector<4x8x8xf32>, vector<4x8x8xf32> -> vector<4x8x8xf32>
    %51 = vector.shape_cast %10 : vector<8x8xf32> to vector<1x8x8xf32>
    %52 = vector.broadcast %51 : vector<1x8x8xf32> to vector<4x8x8xf32>
    %53 = arith.addf %50, %52 : vector<4x8x8xf32>
    %cst_17 = arith.constant dense<0xFF800000> : vector<4x8xf32>
    %54 = vector.multi_reduction <maximumf>, %53, %cst_17 [2] : vector<4x8x8xf32> to vector<4x8xf32>
    %55 = vector.shape_cast %54 : vector<4x8xf32> to vector<4x8x1xf32>
    %56 = vector.broadcast %55 : vector<4x8x1xf32> to vector<4x8x8xf32>
    %57 = arith.subf %53, %56 : vector<4x8x8xf32>
    %58 = math.exp %57 : vector<4x8x8xf32>
    %cst_18 = arith.constant dense<0.000000e+00> : vector<4x8xf32>
    %59 = vector.multi_reduction <add>, %58, %cst_18 [2] : vector<4x8x8xf32> to vector<4x8xf32>
    %60 = vector.shape_cast %59 : vector<4x8xf32> to vector<4x8x1xf32>
    %61 = tpu.reciprocal %60 {approx = true} : vector<4x8x1xf32> -> vector<4x8x1xf32>
    %62 = vector.broadcast %61 : vector<4x8x1xf32> to vector<4x8x8xf32>
    %63 = arith.mulf %58, %62 : vector<4x8x8xf32>
    %c0_19 = arith.constant 0 : index
    %c0_20 = arith.constant 0 : index
    %c0_21 = arith.constant 0 : index
    %c0_22 = arith.constant 0 : index
    %64 = vector.load %arg17[%c0_19, %c0_20, %c0_21, %c0_22] : memref<4x1x8x8xf32, #tpu.memory_space<vmem>>, vector<4x1x8x8xf32>
    %65 = vector.shape_cast %64 : vector<4x1x8x8xf32> to vector<4x8x8xf32>
    %66 = vector.shape_cast %63 : vector<4x8x8xf32> to vector<4x1x8x8xf32>
    tpu.vector_store %arg17[%c0_19, %c0_20, %c0_21, %c0_22], %66 {strides = array<i32>} : memref<4x1x8x8xf32, #tpu.memory_space<vmem>>, vector<4x1x8x8xf32>,
    %cst_23 = arith.constant dense<0.000000e+00> : vector<4x8x8xf32>
    %67 = tpu.matmul %63, %49, %cst_23 {dimension_numbers = #tpu.dot_dimension_numbers<[2], [1], [1], [2], [0, 0, 0, 1, 1, 2], [0], [0]>} : vector<4x8x8xf32>, vector<4x8x8xf32>, vector<4x8x8xf32> -> vector<4x8x8xf32>
    %68 = vector.extract_strided_slice %67 {offsets = [0, 0, 0], sizes = [1, 8, 8], strides = [1, 1, 1]} : vector<4x8x8xf32> to vector<1x8x8xf32>
    %69 = vector.shape_cast %68 : vector<1x8x8xf32> to vector<8x8xf32>
    %70 = vector.extract_strided_slice %67 {offsets = [1, 0, 0], sizes = [1, 8, 8], strides = [1, 1, 1]} : vector<4x8x8xf32> to vector<1x8x8xf32>
    %71 = vector.shape_cast %70 : vector<1x8x8xf32> to vector<8x8xf32>
    %72 = vector.extract_strided_slice %67 {offsets = [2, 0, 0], sizes = [1, 8, 8], strides = [1, 1, 1]} : vector<4x8x8xf32> to vector<1x8x8xf32>
    %73 = vector.shape_cast %72 : vector<1x8x8xf32> to vector<8x8xf32>
    %74 = vector.extract_strided_slice %67 {offsets = [3, 0, 0], sizes = [1, 8, 8], strides = [1, 1, 1]} : vector<4x8x8xf32> to vector<1x8x8xf32>
    %75 = vector.shape_cast %74 : vector<1x8x8xf32> to vector<8x8xf32>
    %76 = tpu.concatenate %69, %71, %73, %75 in 1 : vector<8x8xf32>, vector<8x8xf32>, vector<8x8xf32>, vector<8x8xf32> -> vector<8x32xf32>
    %c0_24 = arith.constant 0 : index
    %c0_25 = arith.constant 0 : index
    %77 = vector.load %arg6[%c0_24, %c0_25] : memref<32x32xf32, #tpu.memory_space<vmem>>, vector<32x32xf32>
    %cst_26 = arith.constant dense<0.000000e+00> : vector<8x32xf32>
    %78 = tpu.matmul %76, %77, %cst_26 {dimension_numbers = #tpu.dot_dimension_numbers<[1], [0], [0], [1], [0, 0, 1, 1], [], []>} : vector<8x32xf32>, vector<32x32xf32>, vector<8x32xf32> -> vector<8x32xf32>
    %c0_27 = arith.constant 0 : index
    %c0_28 = arith.constant 0 : index
    %79 = vector.load %arg7[%c0_27, %c0_28] : memref<1x32xf32, #tpu.memory_space<vmem>>, vector<1x32xf32>
    %80 = vector.shape_cast %79 : vector<1x32xf32> to vector<32xf32>
    %81 = vector.shape_cast %80 : vector<32xf32> to vector<1x32xf32>
    %82 = vector.broadcast %81 : vector<1x32xf32> to vector<8x32xf32>
    %83 = arith.addf %78, %82 : vector<8x32xf32>
    %84 = arith.addf %83, %1 : vector<8x32xf32>
    %c0_29 = arith.constant 0 : index
    %c0_30 = arith.constant 0 : index
    %85 = vector.load %arg8[%c0_29, %c0_30] : memref<1x32xf32, #tpu.memory_space<vmem>>, vector<1x32xf32>
    %86 = vector.shape_cast %85 : vector<1x32xf32> to vector<32xf32>
    %c0_31 = arith.constant 0 : index
    %c0_32 = arith.constant 0 : index
    %87 = vector.load %arg9[%c0_31, %c0_32] : memref<1x32xf32, #tpu.memory_space<vmem>>, vector<1x32xf32>
    %88 = vector.shape_cast %87 : vector<1x32xf32> to vector<32xf32>
    %cst_33 = arith.constant dense<0.000000e+00> : vector<8xf32>
    %89 = vector.multi_reduction <add>, %84, %cst_33 [1] : vector<8x32xf32> to vector<8xf32>
    %90 = vector.shape_cast %89 : vector<8xf32> to vector<8x1xf32>
    %cst_34 = arith.constant 3.200000e+01 : f32
    %91 = vector.broadcast %cst_34 : f32 to vector<8x1xf32>
    %92 = arith.divf %90, %91 : vector<8x1xf32>
    %93 = vector.broadcast %92 : vector<8x1xf32> to vector<8x32xf32>
    %94 = arith.subf %84, %93 : vector<8x32xf32>
    %95 = arith.mulf %94, %94 : vector<8x32xf32>
    %cst_35 = arith.constant dense<0.000000e+00> : vector<8xf32>
    %96 = vector.multi_reduction <add>, %95, %cst_35 [1] : vector<8x32xf32> to vector<8xf32>
    %97 = vector.shape_cast %96 : vector<8xf32> to vector<8x1xf32>
    %cst_36 = arith.constant 3.200000e+01 : f32
    %98 = vector.broadcast %cst_36 : f32 to vector<8x1xf32>
    %99 = arith.divf %97, %98 : vector<8x1xf32>
    %100 = vector.broadcast %92 : vector<8x1xf32> to vector<8x32xf32>
    %101 = arith.subf %84, %100 : vector<8x32xf32>
    %cst_37 = arith.constant 9.99999974E-6 : f32
    %102 = vector.broadcast %cst_37 : f32 to vector<8x1xf32>
    %103 = arith.addf %99, %102 : vector<8x1xf32>
    %104 = math.rsqrt %103 : vector<8x1xf32>
    %105 = vector.broadcast %104 : vector<8x1xf32> to vector<8x32xf32>
    %106 = arith.mulf %101, %105 : vector<8x32xf32>
    %107 = vector.shape_cast %86 : vector<32xf32> to vector<1x32xf32>
    %108 = vector.broadcast %107 : vector<1x32xf32> to vector<8x32xf32>
    %109 = arith.mulf %106, %108 : vector<8x32xf32>
    %110 = vector.shape_cast %88 : vector<32xf32> to vector<1x32xf32>
    %111 = vector.broadcast %110 : vector<1x32xf32> to vector<8x32xf32>
    %112 = arith.addf %109, %111 : vector<8x32xf32>
    %113 = vector.broadcast %3 : vector<8x1xf32> to vector<8x32xf32>
    %114 = arith.mulf %112, %113 : vector<8x32xf32>
    %c0_38 = arith.constant 0 : index
    %c0_39 = arith.constant 0 : index
    %115 = vector.load %arg10[%c0_38, %c0_39] : memref<32x64xf32, #tpu.memory_space<vmem>>, vector<32x64xf32>
    %cst_40 = arith.constant dense<0.000000e+00> : vector<8x64xf32>
    %116 = tpu.matmul %114, %115, %cst_40 {dimension_numbers = #tpu.dot_dimension_numbers<[1], [0], [0], [1], [0, 0, 1, 1], [], []>} : vector<8x32xf32>, vector<32x64xf32>, vector<8x64xf32> -> vector<8x64xf32>
    %c0_41 = arith.constant 0 : index
    %c0_42 = arith.constant 0 : index
    %117 = vector.load %arg11[%c0_41, %c0_42] : memref<1x64xf32, #tpu.memory_space<vmem>>, vector<1x64xf32>
    %118 = vector.shape_cast %117 : vector<1x64xf32> to vector<64xf32>
    %119 = vector.shape_cast %118 : vector<64xf32> to vector<1x64xf32>
    %120 = vector.broadcast %119 : vector<1x64xf32> to vector<8x64xf32>
    %121 = arith.addf %116, %120 : vector<8x64xf32>
    %cst_43 = arith.constant 0.000000e+00 : f32
    %122 = vector.broadcast %cst_43 : f32 to vector<8x64xf32>
    %123 = arith.maximumf %121, %122 : vector<8x64xf32>
    %c0_44 = arith.constant 0 : index
    %c0_45 = arith.constant 0 : index
    %124 = vector.load %arg12[%c0_44, %c0_45] : memref<64x32xf32, #tpu.memory_space<vmem>>, vector<64x32xf32>
    %cst_46 = arith.constant dense<0.000000e+00> : vector<8x32xf32>
    %125 = tpu.matmul %123, %124, %cst_46 {dimension_numbers = #tpu.dot_dimension_numbers<[1], [0], [0], [1], [0, 0, 1, 1], [], []>} : vector<8x64xf32>, vector<64x32xf32>, vector<8x32xf32> -> vector<8x32xf32>
    %c0_47 = arith.constant 0 : index
    %c0_48 = arith.constant 0 : index
    %126 = vector.load %arg13[%c0_47, %c0_48] : memref<1x32xf32, #tpu.memory_space<vmem>>, vector<1x32xf32>
    %127 = vector.shape_cast %126 : vector<1x32xf32> to vector<32xf32>
    %128 = vector.shape_cast %127 : vector<32xf32> to vector<1x32xf32>
    %129 = vector.broadcast %128 : vector<1x32xf32> to vector<8x32xf32>
    %130 = arith.addf %125, %129 : vector<8x32xf32>
    %131 = arith.addf %130, %114 : vector<8x32xf32>
    %c0_49 = arith.constant 0 : index
    %c0_50 = arith.constant 0 : index
    %132 = vector.load %arg14[%c0_49, %c0_50] : memref<1x32xf32, #tpu.memory_space<vmem>>, vector<1x32xf32>
    %133 = vector.shape_cast %132 : vector<1x32xf32> to vector<32xf32>
    %c0_51 = arith.constant 0 : index
    %c0_52 = arith.constant 0 : index
    %134 = vector.load %arg15[%c0_51, %c0_52] : memref<1x32xf32, #tpu.memory_space<vmem>>, vector<1x32xf32>
    %135 = vector.shape_cast %134 : vector<1x32xf32> to vector<32xf32>
    %cst_53 = arith.constant dense<0.000000e+00> : vector<8xf32>
    %136 = vector.multi_reduction <add>, %131, %cst_53 [1] : vector<8x32xf32> to vector<8xf32>
    %137 = vector.shape_cast %136 : vector<8xf32> to vector<8x1xf32>
    %cst_54 = arith.constant 3.200000e+01 : f32
    %138 = vector.broadcast %cst_54 : f32 to vector<8x1xf32>
    %139 = arith.divf %137, %138 : vector<8x1xf32>
    %140 = vector.broadcast %139 : vector<8x1xf32> to vector<8x32xf32>
    %141 = arith.subf %131, %140 : vector<8x32xf32>
    %142 = arith.mulf %141, %141 : vector<8x32xf32>
    %cst_55 = arith.constant dense<0.000000e+00> : vector<8xf32>
    %143 = vector.multi_reduction <add>, %142, %cst_55 [1] : vector<8x32xf32> to vector<8xf32>
    %144 = vector.shape_cast %143 : vector<8xf32> to vector<8x1xf32>
    %cst_56 = arith.constant 3.200000e+01 : f32
    %145 = vector.broadcast %cst_56 : f32 to vector<8x1xf32>
    %146 = arith.divf %144, %145 : vector<8x1xf32>
    %147 = vector.broadcast %139 : vector<8x1xf32> to vector<8x32xf32>
    %148 = arith.subf %131, %147 : vector<8x32xf32>
    %cst_57 = arith.constant 9.99999974E-6 : f32
    %149 = vector.broadcast %cst_57 : f32 to vector<8x1xf32>
    %150 = arith.addf %146, %149 : vector<8x1xf32>
    %151 = math.rsqrt %150 : vector<8x1xf32>
    %152 = vector.broadcast %151 : vector<8x1xf32> to vector<8x32xf32>
    %153 = arith.mulf %148, %152 : vector<8x32xf32>
    %154 = vector.shape_cast %133 : vector<32xf32> to vector<1x32xf32>
    %155 = vector.broadcast %154 : vector<1x32xf32> to vector<8x32xf32>
    %156 = arith.mulf %153, %155 : vector<8x32xf32>
    %157 = vector.shape_cast %135 : vector<32xf32> to vector<1x32xf32>
    %158 = vector.broadcast %157 : vector<1x32xf32> to vector<8x32xf32>
    %159 = arith.addf %156, %158 : vector<8x32xf32>
    %160 = vector.broadcast %3 : vector<8x1xf32> to vector<8x32xf32>
    %161 = arith.mulf %159, %160 : vector<8x32xf32>
    %c0_58 = arith.constant 0 : index
    %c0_59 = arith.constant 0 : index
    %c0_60 = arith.constant 0 : index
    %162 = vector.load %arg16[%c0_58, %c0_59, %c0_60] : memref<1x8x32xf32, #tpu.memory_space<vmem>>, vector<1x8x32xf32>
    %163 = vector.shape_cast %162 : vector<1x8x32xf32> to vector<8x32xf32>
    %164 = vector.shape_cast %161 : vector<8x32xf32> to vector<1x8x32xf32>
    tpu.vector_store %arg16[%c0_58, %c0_59, %c0_60], %164 {strides = array<i32>} : memref<1x8x32xf32, #tpu.memory_space<vmem>>, vector<1x8x32xf32>,
    return
  }
  func.func @transform_0(%arg0: i32) -> (i32, i32, i32) {
    %c0_i32 = arith.constant 0 : i32
    %c0_i32_0 = arith.constant 0 : i32
    %c0_i32_1 = arith.constant 0 : i32
    return %arg0, %c0_i32, %c0_i32_0 : i32, i32, i32
  }
  func.func @transform_1(%arg0: i32) -> (i32, i32, i32) {
    %c0_i32 = arith.constant 0 : i32
    %c0_i32_0 = arith.constant 0 : i32
    %c0_i32_1 = arith.constant 0 : i32
    return %arg0, %c0_i32, %c0_i32_0 : i32, i32, i32
  }
  func.func @transform_2(%arg0: i32) -> (i32, i32, i32) {
    %c0_i32 = arith.constant 0 : i32
    %c0_i32_0 = arith.constant 0 : i32
    %c0_i32_1 = arith.constant 0 : i32
    return %arg0, %c0_i32, %c0_i32_0 : i32, i32, i32
  }
  func.func @transform_3(%arg0: i32) -> (i32, i32) {
    %c0_i32 = arith.constant 0 : i32
    %c0_i32_0 = arith.constant 0 : i32
    %c0_i32_1 = arith.constant 0 : i32
    return %c0_i32, %c0_i32_0 : i32, i32
  }
  func.func @transform_4(%arg0: i32) -> (i32, i32) {
    %c0_i32 = arith.constant 0 : i32
    %c0_i32_0 = arith.constant 0 : i32
    %c0_i32_1 = arith.constant 0 : i32
    return %c0_i32, %c0_i32_0 : i32, i32
  }
  func.func @transform_5(%arg0: i32) -> (i32, i32) {
    %c0_i32 = arith.constant 0 : i32
    %c0_i32_0 = arith.constant 0 : i32
    %c0_i32_1 = arith.constant 0 : i32
    return %c0_i32, %c0_i32_0 : i32, i32
  }
  func.func @transform_6(%arg0: i32) -> (i32, i32) {
    %c0_i32 = arith.constant 0 : i32
    %c0_i32_0 = arith.constant 0 : i32
    %c0_i32_1 = arith.constant 0 : i32
    return %c0_i32, %c0_i32_0 : i32, i32
  }
  func.func @transform_7(%arg0: i32) -> (i32, i32) {
    %c0_i32 = arith.constant 0 : i32
    %c0_i32_0 = arith.constant 0 : i32
    %c0_i32_1 = arith.constant 0 : i32
    return %c0_i32, %c0_i32_0 : i32, i32
  }
  func.func @transform_8(%arg0: i32) -> (i32, i32) {
    %c0_i32 = arith.constant 0 : i32
    %c0_i32_0 = arith.constant 0 : i32
    %c0_i32_1 = arith.constant 0 : i32
    return %c0_i32, %c0_i32_0 : i32, i32
  }
  func.func @transform_9(%arg0: i32) -> (i32, i32) {
    %c0_i32 = arith.constant 0 : i32
    %c0_i32_0 = arith.constant 0 : i32
    %c0_i32_1 = arith.constant 0 : i32
    return %c0_i32, %c0_i32_0 : i32, i32
  }
  func.func @transform_10(%arg0: i32) -> (i32, i32) {
    %c0_i32 = arith.constant 0 : i32
    %c0_i32_0 = arith.constant 0 : i32
    %c0_i32_1 = arith.constant 0 : i32
    return %c0_i32, %c0_i32_0 : i32, i32
  }
  func.func @transform_11(%arg0: i32) -> (i32, i32) {
    %c0_i32 = arith.constant 0 : i32
    %c0_i32_0 = arith.constant 0 : i32
    %c0_i32_1 = arith.constant 0 : i32
    return %c0_i32, %c0_i32_0 : i32, i32
  }
  func.func @transform_12(%arg0: i32) -> (i32, i32) {
    %c0_i32 = arith.constant 0 : i32
    %c0_i32_0 = arith.constant 0 : i32
    %c0_i32_1 = arith.constant 0 : i32
    return %c0_i32, %c0_i32_0 : i32, i32
  }
  func.func @transform_13(%arg0: i32) -> (i32, i32) {
    %c0_i32 = arith.constant 0 : i32
    %c0_i32_0 = arith.constant 0 : i32
    %c0_i32_1 = arith.constant 0 : i32
    return %c0_i32, %c0_i32_0 : i32, i32
  }
  func.func @transform_14(%arg0: i32) -> (i32, i32) {
    %c0_i32 = arith.constant 0 : i32
    %c0_i32_0 = arith.constant 0 : i32
    %c0_i32_1 = arith.constant 0 : i32
    return %c0_i32, %c0_i32_0 : i32, i32
  }
  func.func @transform_15(%arg0: i32) -> (i32, i32, i32) {
    %c0_i32 = arith.constant 0 : i32
    %c0_i32_0 = arith.constant 0 : i32
    %c0_i32_1 = arith.constant 0 : i32
    return %arg0, %c0_i32, %c0_i32_0 : i32, i32, i32
  }
  func.func @transform_16(%arg0: i32) -> (i32, i32, i32, i32) {
    %c0_i32 = arith.constant 0 : i32
    %c0_i32_0 = arith.constant 0 : i32
    %c0_i32_1 = arith.constant 0 : i32
    %c0_i32_2 = arith.constant 0 : i32
    return %c0_i32, %arg0, %c0_i32_0, %c0_i32_1 : i32, i32, i32, i32
  }
}

</mosaic_0001>

<bundles_post_ra>
// kernel: tpu_custom_call.1
= control target key start
LH: loop header
LB: loop body
LE: loop exit
PB: predicated region body
PF: predicated region fallthrough
CT: control target
= control target key end

     0   :  { %s2854_s0 = inlined_call_operand.hbm [shape: f32[2,8,32], index: 0, kind: input, shape index: {}]   ;;  %s2855_s1 = inlined_call_operand.vmem [shape: f32[2,8,1], index: 1, kind: input, shape index: {}]   ;;  %s2856_s2 = inlined_call_operand.hbm [shape: f32[2,8,8], index: 2, kind: input, shape index: {}]   ;;  %s2857_s3 = inlined_call_operand.vmem [shape: f32[32,96], index: 3, kind: input, shape index: {}]   ;;  %s2858_s4 = inlined_call_operand.vmem [shape: f32[1,96], index: 4, kind: input, shape index: {}]   ;;  %s2859_s5 = inlined_call_operand.vmem [shape: f32[32,32], index: 5, kind: input, shape index: {}]   ;;  %s2860_s6 = inlined_call_operand.vmem [shape: f32[1,32], index: 6, kind: input, shape index: {}]   ;;  %s2861_s7 = inlined_call_operand.vmem [shape: f32[1,32], index: 7, kind: input, shape index: {}]   ;;  %s2862_s8 = inlined_call_operand.vmem [shape: f32[1,32], index: 8, kind: input, shape index: {}]   ;;  %s2863_s9 = inlined_call_operand.vmem [shape: f32[32,64], index: 9, kind: input, shape index: {}]   ;;  %s2864_s10 = inlined_call_operand.vmem [shape: f32[1,64], index: 10, kind: input, shape index: {}]   ;;  %s2865_s11 = inlined_call_operand.vmem [shape: f32[64,32], index: 11, kind: input, shape index: {}]   ;;  %s2866_s12 = inlined_call_operand.vmem [shape: f32[1,32], index: 12, kind: input, shape index: {}]   ;;  %s2867_s13 = inlined_call_operand.vmem [shape: f32[1,32], index: 13, kind: input, shape index: {}]   ;;  %s2868_s14 = inlined_call_operand.vmem [shape: f32[1,32], index: 14, kind: input, shape index: {}]   ;;  %s2869_s15 = inlined_call_operand.hbm [shape: f32[2,8,32], index: 15, kind: output, shape index: {0}]   ;;  %s2870_s16 = inlined_call_operand.hbm [shape: f32[4,2,8,8], index: 16, kind: output, shape index: {1}]  }
   0x1   :  { %2886 = sst [smem:[#allocation19_spill]] %s2854_s0 }
   0x2   :  { %2887 = sst [smem:[#allocation20_spill]] %s2855_s1 }
   0x3   :  { %2888 = sst [smem:[#allocation21_spill]] %s2867_s13 }
   0x4   :  { %2889 = sst [smem:[#allocation22_spill]] %s2868_s14 }
   0x5   :  { %2890 = sst [smem:[#allocation23_spill]] %s2869_s15 }
   0x6   :  { %2891 = sst [smem:[#allocation24_spill]] %s2870_s16 }
   0x7   :  { %22 = vsyncpa [#allocation3], 0 }
   0x8   :  { %24 = vsyncpa [#allocation3 + $0x1], 0 }
   0x9   :  { %25 = vsyncpa [#allocation6], 0 }
   0xa   :  { %27 = vsyncpa [#allocation6 + $0x1], 0 }
   0xb   :  { %28 = vsyncpa [#allocation4], 0 }
   0xc   :  { %30 = vsyncpa [#allocation4 + $0x1], 0 }
   0xd   :  { %31 = vsyncpa [#allocation9], 0 }
   0xe   :  { %33 = vsyncpa [#allocation9 + $0x1], 0  ;;  %s2402_s21 = smov 0   ;;  %s2404_s22 = smov 0  }
   0xf   :  { %s2406_s23 = smov 0   ;;  %s2408_s24 = smov 0  }
  0x10 LB: > { %2892 = sst [smem:[#allocation14_spill]] %s2286_s21  ;;  %s2423_s25 = sadd.s32 4294967295, %s2298_s24   ;;  %s2298_s24 = sphi %s2408_s24, %s2922_s24   ;;  %s2294_s23 = sphi %s2406_s23, %s2924_s23   ;;  %s2290_s22 = sphi %s2404_s22, %s2926_s22   ;;  %s2286_s21 = sphi %s2402_s21, %s2925_s21  }
  0x11   : > { %2893 = sst [smem:[#allocation15_spill]] %s2294_s23  ;;  %s1879_s26 = sadd.s32 4294967294, %s2298_s24  }
  0x12   : > { %s2427_s27 = sadd.s32 1, %s2298_s24   ;;  %s46_s28 = sadd.s32 1, %s2294_s23 }
  0x13   : > { %2894 = sst [smem:[#allocation16_spill]] %s2427_s27  ;;  %s43_s29 = ssub.s32 %s2298_s24, %s2427_s27 }
  0x14   : > { %p53_p0 = scmp.ne.s32.totalorder %s2294_s23, %s2290_s22  ;;  %p44_p1 = scmp.eq.s32.totalorder %s43_s29, 0 }
  0x15   : > { %p54_p2 = scmp.eq.s32.totalorder %s2298_s24, 0  ;;  %p59_p3 = scmp.ne.s32.totalorder %s2290_s22, %s2286_s21 }
  0x16   : > { %p60_p4 = scmp.eq.s32.totalorder %s2423_s25, 0  ;;  %p387_p7 = scmp.eq.s32.totalorder %s2423_s25, 1 }
  0x17   : > { %s2439_s30 = scalar_select %p44_p1, %s2294_s23, %s46_s28  }
  0x18   : > { %p2441_p5 = por %p54_p2, %p53_p0  ;;  %p2445_p6 = por %p60_p4, %p59_p3 }
  0x19   : > { %2895 = sst [smem:[#allocation17_spill]] %s2439_s30  ;;  %p393_p8 = scmp.eq.s32.totalorder %s1879_s26, 1 }
  0x1a   : > { %s2897_s17 = scalar_select %p2445_p6, 1, 0 }
  0x1b   : > { %p2076_p10 = scmp.lt.s32.totalorder %s2298_s24, 2  ;;  %p2452_p11 = por %p387_p7, %p53_p0 }
  0x1c   : > { %p2456_p12 = por %p393_p8, %p59_p3  ;;  %s2461_s20 = sand.u32 1, %s2294_s23  }
  0x1d   : > { %s2898_s18 = scalar_select %p2452_p11, 1, 0 }
  0x1e   : > { %s2899_s19 = scalar_select %p2456_p12, 1, 0 }
  0x1f   : > { %s2878_s28 = sshll.u32 %s2298_s24, 7  ;;  %s2877_s29 = sshll.u32 %s2461_s20, 3 }
  0x20   : > { %2900 = sst [smem:[#allocation18_spill]] %s2899_s19  ;;  %s479_s15 = scalar_lea.vmem [#allocation2], %s2877_s29 }
  0x21   : > { %s2901_s27 = sld [smem:[#allocation19_spill]]  ;;  %s486_s14 = sshll.u32 %s479_s15, 4  ;;  %s2480_s14 = int_to_ptr.vmem [resolvable:$true] %s486_s14 }
  0x22   : > { %p2476_p13 = pnand %p2076_p10, %p2441_p5  ;;  %s476_s30 = scalar_lea.sflag [#allocation3], %s2461_s20 }
  0x24   : > { %p2146_p3 = pneg %p2476_p13 }
  0x27   : > { %s2470_s21 = scalar_lea.hbm %s2901_s27, %s2878_s28  ;;  %s2149_s29 = scalar_lea.hbm %s2901_s27, 256 }
  0x28   : > { %s2144_s26 = scalar_lea.hbm %s2470_s21, 128  ;;  %p2150_p5 = scmp.lt.s32.totalorder %s2470_s21, %s2901_s27 }
  0x29   : > { %p2145_p2 = scmp.ne.s32.totalorder %s2470_s21, %s2144_s26  ;;  %p2151_p8 = scmp.lt.s32.totalorder %s2149_s29, %s2144_s26 }
  0x2b   : > { %p2147_p4 = pnand %p2146_p3, %p2145_p2  ;;  %p2152_p10 = por %p2151_p8, %p2150_p5 }
  0x2d   : > { %p2148_p7 = pneg %p2147_p4 }
  0x2f   : > { %p2153_p9 = pnand %p2152_p10, %p2148_p7 }
  0x31   : > { %2156 = shalt.err (!%p2153_p9)
}
  0x32   : > { %s2157_s13 = scalar_lea.vmem %s2480_s14, 128  ;;  %s2300_s15 = smov [#allocation2]  }
  0x33   : > { %p2158_p0 = scmp.ne.s32.totalorder %s2480_s14, %s2157_s13  ;;  %s2162_s0 = sshll.u32 %s2300_s15, 4  ;;  %s2163_s0 = int_to_ptr.vmem [resolvable:$false] %s2162_s0 }
  0x34   : > { %s2164_s16 = scalar_lea.vmem %s2163_s0, 256  ;;  %p2165_p1 = scmp.lt.s32.totalorder %s2480_s14, %s2163_s0 }
  0x35   : > { %p2160_p2 = pnand %p2158_p0, %p2146_p3  ;;  %p2166_p12 = scmp.lt.s32.totalorder %s2164_s16, %s2157_s13 }
  0x37   : > { %p2161_p4 = pneg %p2160_p2  ;;  %p2167_p11 = por %p2166_p12, %p2165_p1 }
  0x39   : > { %p2168_p5 = pnand %p2167_p11, %p2161_p4 }
  0x3b   : > { %2171 = shalt.err (!%p2168_p5)
}
  0x3c   : > { %2065 = dma.hbm_to_vmem [thread:$0]  (!%p2476_p13), %s2470_s21, 128, %s2480_s14, %s476_s30  }
  0x3d   : > { %p2903_p9 = scmp.lt.s32.totalorder %s2298_s24, 3  ;;  %p2904_p0 = scmp.ge.s32.totalorder %s2298_s24, 1 }
  0x3e   : > { %s2906_s13 = sshll.u32 %s2298_s24, 7  ;;  %s2907_s26 = sshll.u32 %s2461_s20, 3 }
  0x3f   : > { %p2513_p7 = pnand %p2904_p0, %p2903_p9  ;;  %s2522_s29 = scalar_lea.hbm %s2856_s2, %s2906_s13 }
  0x40   : > { %s504_s15 = scalar_lea.vmem [#allocation5], %s2907_s26  ;;  %s501_s14 = scalar_lea.sflag [#allocation6], %s2461_s20 }
  0x41   : > { %s2905_s19 = scalar_select %p2513_p7, 1, 0 }
  0x42   : > { %s511_s0 = sshll.u32 %s504_s15, 4  ;;  %s2172_s21 = scalar_lea.hbm %s2522_s29, 128  ;;  %s512_s0 = int_to_ptr.vmem [resolvable:$true] %s511_s0 }
  0x43   : > { %p2173_p11 = scmp.ne.s32.totalorder %s2522_s29, %s2172_s21  ;;  %s2177_s16 = scalar_lea.hbm %s2856_s2, 256 }
  0x44   : > { %p2178_p8 = scmp.lt.s32.totalorder %s2522_s29, %s2856_s2  ;;  %p2179_p10 = scmp.lt.s32.totalorder %s2177_s16, %s2172_s21 }
  0x45   : > { %p2175_p12 = pnand %p2173_p11, %p2146_p3 }
  0x46   : > { %p2180_p2 = por %p2179_p10, %p2178_p8 }
  0x47   : > { %p2176_p1 = pneg %p2175_p12 }
  0x49   : > { %p2181_p4 = pnand %p2180_p2, %p2176_p1 }
  0x4b   : > { %2184 = shalt.err (!%p2181_p4)
}
  0x4c   : > { %s2185_s26 = scalar_lea.vmem %s512_s0, 128  ;;  %s2301_s20 = smov [#allocation5]  }
  0x4d   : > { %p2186_p5 = scmp.ne.s32.totalorder %s512_s0, %s2185_s26  ;;  %s2190_s15 = sshll.u32 %s2301_s20, 4  ;;  %s2191_s15 = int_to_ptr.vmem [resolvable:$false] %s2190_s15 }
  0x4e   : > { %s2192_s27 = scalar_lea.vmem %s2191_s15, 256  ;;  %p2193_p11 = scmp.lt.s32.totalorder %s512_s0, %s2191_s15 }
  0x4f   : > { %p2188_p9 = pnand %p2186_p5, %p2146_p3  ;;  %p2194_p12 = scmp.lt.s32.totalorder %s2192_s27, %s2185_s26 }
  0x51   : > { %p2189_p0 = pneg %p2188_p9  ;;  %p2195_p6 = por %p2194_p12, %p2193_p11 }
  0x53   : > { %p2196_p7 = pnand %p2195_p6, %p2189_p0 }
  0x55   : > { %2199 = shalt.err (!%p2196_p7)
}
  0x56   : > { %2068 = dma.hbm_to_vmem [thread:$0]  (!%p2476_p13), %s2522_s29, 128, %s512_s0, %s501_s14  }
  0x57   : > { %p2908_p1 = scmp.ne.s32.totalorder %s2905_s19, 0 }
  0x58   : > { %s2548_s21 = sand.u32 (!%p2908_p1), 1, %s2290_s22   ;;  %p2909_p6 = scmp.ne.s32.totalorder (!%p2908_p1), %s2897_s17, 0 }
  0x59   : > { %520 = sbr.rel (%p2908_p1) target bundleno = 2584 (0xa18), region = 80  ;;  %s2551_s30 = sshll.u32 (!%p2908_p1), %s2548_s21, 3 }
  0x5a   : > { %s523_s16 = scalar_lea.sflag (!%p2908_p1), [#allocation3], %s2548_s21  ;;  %s526_s13 = scalar_lea.vmem (!%p2908_p1), [#allocation2], %s2551_s30 }
  0x5e   : > { %2269 = dma.done.wait (%p2909_p6), %s523_s16, 128  }
  0x5f   : > { %2271 = vsyncadd (%p2909_p6), %s523_s16, 4294967168  ;;  %s532_s23 = scalar_lea.sflag [#allocation6], %s2548_s21  ;;  %s535_s19 = scalar_lea.vmem [#allocation5], %s2551_s30 }
  0x60   : > { %2273 = dma.done.wait (%p2909_p6), %s532_s23, 128  }
  0x61   : > { %2275 = vsyncadd (%p2909_p6), %s532_s23, 4294967168  ;;  %v2302_v0 = vmov 0.0   ;;  %vm2303_vm0 = vmmov 0   ;;  %v610_v1 = vld [vmem:[%s2857_s3 + $0x18] sm:$0xff]  ;;  %v609_v2 = vld [vmem:[%s2857_s3 + $0x10] sm:$0xff]  ;;  %vm618_vm1 = vcmask 261120  }
  0x62   : > { %1962 = vmatprep.subr.mxu1 %v2302_v0  ;;  %1970 = vmatprep.mubr.msk.f32.mxu1 %vm2303_vm0, %v2302_v0  ;;  %v608_v3 = vld [vmem:[%s2857_s3 + $0x8] sm:$0xff]  ;;  %v607_v4 = vld [vmem:[%s2857_s3] sm:$0xff]  ;;  %s2305_s23 = smov 120   ;;  %s2306_s29 = smov 96   ;;  %vm709_vm2 = vcmask 64512   ;;  %v604_v21 = vld [vmem:[%s535_s19] sm:$0xff] }
  0x63   : > { %1983 = vmatprep.subr.mxu0 %v2302_v0  ;;  %1985 = vmatprep.mubr.msk.f32.mxu0 %vm2303_vm0, %v2302_v0  ;;  %v2585_v5 = vld [vmem:[%s526_s13] sm:$0xff]  ;;  %s2304_s13 = smov 104   ;;  %s2307_s0 = smov 112   ;;  %vm605_vm3 = vcmp.ne.f32.partialorder %v604_v21, 0.0  ;;  %vm1377_vm4 = vcmask 130048   ;;  %vm1379_vm5 = vcmask 195584  }
  0x64   : > { %1963 = vmatpush3.msra.mxu1 %v610_v1  ;;  %v1892_v6 = vld [vmem:[%s2858_s4] ss:$0 sm:$0xff]  ;;  %v606_v22 = vsel %vm605_vm3, -1e+30, %v2302_v0  ;;  %s2308_s19 = smov 64   ;;  %s1890_s14 = sshll.u32 %s2548_s21, 5 }
  0x65   : > { %1964 = vmatprep.subr.mxu1 %v2302_v0  ;;  %s2653_s28 = scalar_lea.vmem [#allocation8], %s1890_s14  ;;  %p598_p13 = scmp.lt.s32.totalorder %s2423_s25, 1  ;;  %vm1602_vm6 = vcmask 523264  }
  0x66   : > { %1965 = vmatpush3.msra.mxu1 %v609_v2  ;;  %s2910_s1 = sld [smem:[#allocation20_spill]]  ;;  %s2884_s16 = sshll.u32 %s2423_s25, 7 }
  0x67   : > { %1966 = vmatprep.subr.mxu1 %v2302_v0  ;;  %s599_s26 = scalar_select %p598_p13, %s2423_s25, 1 }
  0x68   : > { %1967 = vmatpush3.msra.mxu1 %v608_v3  ;;  %s1739_s14 = sshll.u32 %s2653_s28, 4  ;;  %p2912_p7 = scmp.ne.s32.totalorder %s2898_s18, 0  ;;  %s2783_s14 = int_to_ptr.vmem [resolvable:$true] %s1739_s14 }
  0x69   : > { %1968 = vmatprep.subr.mxu1 %v2302_v0  ;;  %s1891_s20 = sshll.u32 %s599_s26, 3  ;;  %s2200_s26 = scalar_lea.vmem %s2783_s14, 512 }
  0x6a   : > { %1969 = vmatpush3.msra.mxu1 %v607_v4  ;;  %p2201_p3 = scmp.ne.s32.totalorder %s2783_s14, %s2200_s26  ;;  %s2313_s15 = smov [#allocation8]  }
  0x6b   : > { %1971 = vmatmul.mubr.msk.f32.vlgmr.msra.gmra.mxu1 %vm618_vm1, %v2585_v5  ;;  %1973 = vmatprep.subr.mxu1 %v2302_v0 }
  0x6c   : > { %1975 = vmatprep.mubr.msk.f32.mxu1 %vm2303_vm0, %v2302_v0  ;;  %p2202_p8 = pnand %p2201_p3, %p2912_p7 }
  0x6e   : > { %p2203_p10 = pneg %p2202_p8 }
 0x12b   : > { %v688_v7 = vpop.f32.mrf.mxu1 }
 0x12c   : > { %v2596_v8 = vadd.f32 %v1892_v6, %v688_v7 }
 0x12d   : > { %v1972_v9 = vpop.f32.mrf.mxu1 }
 0x12e   : > { %705 = vrot.lane.b32.xlu1 %v2596_v8, %s2304_s13  ;;  %701 = vrot.lane.b32.xlu0 %v2596_v8, %s2305_s23  ;;  %v692_v10 = vmul.f32 0.35355338, %v2596_v8 }
 0x132   : > { %707 = vrot.lane.b32.xlu1 %v2596_v8, %s2306_s29  ;;  %703 = vrot.lane.b32.xlu0 %v2596_v8, %s2307_s0 }
 0x136   : > { %694 = vrot.lane.b32.xlu1 %v692_v10, %s2305_s23 }
 0x1a0   : > { %v2603_v11 = vpop.permute.xlu1 %705  ;;  %v2605_v12 = vpop.permute.xlu0 %701 }
 0x1a1   : > { %784 = vrot.lane.b32.xlu0 %v2605_v12, %s2306_s29  ;;  %936 = vrot.lane.b32.xlu1 %v2603_v11, %s2306_s29 }
 0x1a4   : > { %v708_v13 = vpop.permute.xlu1 %707  ;;  %v2609_v14 = vpop.permute.xlu0 %703 }
 0x1a5   : > { %1974 = vmatpush3.xpose.msk.msra.mxu1 %vm709_vm2, %v708_v13  ;;  %860 = vrot.lane.b32.xlu0 %v2609_v14, %s2306_s29  ;;  %s2309_s29 = smov 8  }
 0x1a6   : > { %698 = vrot.lane.b32.xlu1 %v692_v10, %s2304_s13  ;;  %1978 = vmatprep.subr.mxu1 %v2302_v0 }
 0x1a8   : > { %1976 = vmatmul.mubr.msk.f32.vlgmr.msra.gmra.mxu1 %vm709_vm2, %v692_v10  ;;  %v695_v15 = vpop.permute.xlu1 %694 }
 0x1a9   : > { %696 = vrot.lane.b32.xlu0 %v692_v10, %s2307_s0  ;;  %1980 = vmatprep.mubr.msk.f32.mxu1 %vm2303_vm0, %v2302_v0  ;;  %s2310_s0 = smov 16  }
 0x213   : > { %v785_v16 = vpop.permute.xlu0 %784  ;;  %v937_v17 = vpop.permute.xlu1 %936 }
 0x214   : > { %1979 = vmatpush3.xpose.msk.msra.mxu1 %vm709_vm2, %v785_v16  ;;  %v1383_v16 = vld [vmem:[%s2859_s5 + $0x10] sm:$0xff] }
 0x215   : > { %1988 = vmatprep.subr.mxu1 %v2302_v0 }
 0x217   : > { %v861_v18 = vpop.permute.xlu0 %860  ;;  %1981 = vmatmul.mubr.msk.f32.vlgmr.msra.gmra.mxu1 %vm709_vm2, %v695_v15  ;;  %v1384_v15 = vld [vmem:[%s2859_s5 + $0x18] sm:$0xff] }
 0x218   : > { %1984 = vmatpush3.xpose.msk.msra.mxu0 %vm709_vm2, %v861_v18  ;;  %1989 = vmatpush3.xpose.msk.msra.mxu1 %vm709_vm2, %v937_v17  ;;  %v699_v19 = vpop.permute.xlu1 %698  ;;  %v1382_v17 = vld [vmem:[%s2859_s5 + $0x8] sm:$0xff]  ;;  %v1381_v18 = vld [vmem:[%s2859_s5] sm:$0xff] }
 0x219   : > { %1990 = vmatprep.mubr.msk.f32.mxu1 %vm2303_vm0, %v2302_v0  ;;  %1993 = vmatprep.subr.mxu0 %v2302_v0 }
 0x21a   : > { %1998 = vmatprep.subr.mxu1 %v2302_v0 }
 0x21b   : > { %v697_v20 = vpop.permute.xlu0 %696  ;;  %1991 = vmatmul.mubr.msk.f32.vlgmr.msra.gmra.mxu1 %vm709_vm2, %v699_v19 }
 0x21c   : > { %1986 = vmatmul.mubr.msk.f32.vlgmr.msra.gmra.mxu0 %vm709_vm2, %v697_v20  ;;  %2000 = vmatprep.mubr.msk.f32.mxu1 %vm2303_vm0, %v2302_v0 }
 0x21d   : > { %1995 = vmatprep.mubr.msk.f32.mxu0 %vm2303_vm0, %v2302_v0 }
 0x268   : > { %v780_v23 = vpop.f32.mrf.mxu1 }
 0x269   : > { %v781_v24 = vadd.f32 %v780_v23, %v606_v22 }
 0x26a   : > { %v1977_v25 = vpop.f32.mrf.mxu1 }
 0x26b   : > { %v1012_v26 = vsel %vm709_vm2, %v781_v24, -inf }
 0x26c   : > { %1013 = vmax.xlane.f32.xlu0 %v1012_v26 }
 0x2d7   : > { %v856_v27 = vpop.f32.mrf.mxu1 }
 0x2d8   : > { %v857_v28 = vadd.f32 %v856_v27, %v606_v22 }
 0x2d9   : > { %v1982_v29 = vpop.f32.mrf.mxu1 }
 0x2da   : > { %v1015_v30 = vsel %vm709_vm2, %v857_v28, -inf }
 0x2db   : > { %1016 = vmax.xlane.f32.xlu1 %v1015_v30  ;;  %v1008_v31 = vpop.f32.mrf.mxu1 }
 0x2dc   : > { %v932_v32 = vpop.f32.mrf.mxu0  ;;  %v1009_v36 = vadd.f32 %v1008_v31, %v606_v22  ;;  %v1906_v31 = vld [vmem:[%s2860_s6] ss:$0 sm:$0xff] }
 0x2dd   : > { %v933_v33 = vadd.f32 %v932_v32, %v606_v22  ;;  %v1992_v34 = vpop.f32.mrf.mxu1 }
 0x2de   : > { %v1987_v35 = vpop.f32.mrf.mxu0  ;;  %v1021_v38 = vsel %vm709_vm2, %v1009_v36, -inf }
 0x2df   : > { %v1018_v37 = vsel %vm709_vm2, %v933_v33, -inf }
 0x2e0   : > { %1019 = vmax.xlane.f32.xlu0 %v1018_v37  ;;  %v2312_v37 = vmov 0  }
 0x2e1   : > { %2123 = vset.pattern.permute.xlu0 %v2312_v37 }
 0x2e4   : > { %1022 = vmax.xlane.f32.xlu0 %v1021_v38 }
 0x2ec   : > { %1060 = vrot.lane.b32.xlu1 %v2596_v8, %s2308_s19 }
 0x2f5   : > { %v1014_v39 = vpop.xlane.xlu0 %1013 }
 0x2f6   : > { %v1024_v40 = vsub.f32 %v781_v24, %v1014_v39 }
 0x2f8   : > { %v1028_v41 = vmul.f32 1.442695, %v1024_v40 }
 0x2fa   : > { %2124 = vpow2.f32 %v1028_v41 }
 0x307   : > { %v2125_v42 = vpop.eup %2124 }
 0x308   : > { %v1036_v43 = vsel %vm709_vm2, %v2125_v42, 0.0 }
 0x310   : > { %1037 = vadd.xlane.f32.xlu1 %v1036_v43  ;;  %v1505_v43 = vld [vmem:[%s2863_s9 + $0x18] sm:$0xff] }
 0x364   : > { %v1017_v44 = vpop.xlane.xlu1 %1016 }
 0x365   : > { %v1025_v45 = vsub.f32 %v857_v28, %v1017_v44  ;;  %v1503_v44 = vld [vmem:[%s2863_s9 + $0x8] sm:$0xff] }
 0x367   : > { %v1030_v46 = vmul.f32 1.442695, %v1025_v45 }
 0x368   : > { %v1061_v47 = vpop.permute.xlu1 %1060 }
 0x369   : > { %2126 = vpow2.f32 %v1030_v46  ;;  %v1020_v48 = vpop.xlane.xlu0 %1019  ;;  %1994 = vmatpush3.msra.mxu0 %v1061_v47  ;;  %v1502_v46 = vld [vmem:[%s2863_s9] sm:$0xff]  ;;  %v1594_v47 = vld [vmem:[%s2865_s11 + $0x38] sm:$0xff] }
 0x36a   : > { %v1026_v49 = vsub.f32 %v933_v33, %v1020_v48  ;;  %2003 = vmatprep.subr.mxu0 %v2302_v0  ;;  %v1593_v48 = vld [vmem:[%s2865_s11 + $0x30] sm:$0xff] }
 0x36c   : > { %v1032_v50 = vmul.f32 1.442695, %v1026_v49  ;;  %v1592_v49 = vld [vmem:[%s2865_s11 + $0x28] sm:$0xff] }
 0x36d   : > { %v1023_v51 = vpop.xlane.xlu0 %1022 }
 0x36e   : > { %2128 = vpow2.f32 %v1032_v50  ;;  %v1027_v52 = vsub.f32 %v1009_v36, %v1023_v51  ;;  %v1591_v50 = vld [vmem:[%s2865_s11 + $0x20] sm:$0xff]  ;;  %v1590_v51 = vld [vmem:[%s2865_s11 + $0x18] sm:$0xff] }
 0x370   : > { %v1034_v53 = vmul.f32 1.442695, %v1027_v52 }
 0x372   : > { %2130 = vpow2.f32 %v1034_v53 }
 0x376   : > { %v2127_v54 = vpop.eup %2126 }
 0x377   : > { %v1039_v55 = vsel %vm709_vm2, %v2127_v54, 0.0 }
 0x378   : > { %1040 = vadd.xlane.f32.xlu0 %v1039_v55 }
 0x37b   : > { %v2129_v56 = vpop.eup %2128 }
 0x37c   : > { %v1042_v57 = vsel %vm709_vm2, %v2129_v56, 0.0 }
 0x37d   : > { %1043 = vadd.xlane.f32.xlu1 %v1042_v57 }
 0x37f   : > { %v2131_v58 = vpop.eup %2130 }
 0x380   : > { %v1045_v59 = vsel %vm709_vm2, %v2131_v58, 0.0 }
 0x381   : > { %1046 = vadd.xlane.f32.xlu0 %v1045_v59 }
 0x38e   : > { %1212 = vrot.lane.b32.xlu1 %v2609_v14, %s2308_s19 }
 0x392   : > { %1288 = vrot.lane.b32.xlu1 %v2603_v11, %s2308_s19 }
 0x397   : > { %1136 = vrot.lane.b32.xlu0 %v2605_v12, %s2308_s19  ;;  %s2311_s19 = smov 24  }
 0x399   : > { %v1038_v60 = vpop.xlane.xlu1 %1037 }
 0x39a   : > { %2132 = vrcp.f32 %v1038_v60 }
 0x3a7   : > { %v2133_v61 = vpop.eup %2132 }
 0x3a8   : > { %v1052_v62 = vmul.f32 %v2133_v61, %v2125_v42 }
 0x3aa   : > { %1056 = vst.msk [vmem:[%s2653_s28] sm:$0xff] %vm709_vm2, %v1052_v62  ;;  %1996 = vmatmul.mubr.msk.f32.vlgmr.msra.gmra.mxu0 %vm709_vm2, %v1052_v62 }
 0x3ab   : > { %2005 = vmatprep.mubr.msk.f32.mxu0 %vm2303_vm0, %v2302_v0 }
 0x401   : > { %v1041_v63 = vpop.xlane.xlu0 %1040 }
 0x402   : > { %2134 = vrcp.f32 %v1041_v63  ;;  %v1589_v63 = vld [vmem:[%s2865_s11 + $0x10] sm:$0xff] }
 0x406   : > { %v1044_v1 = vpop.xlane.xlu1 %1043 }
 0x407   : > { %2136 = vrcp.f32 %v1044_v1  ;;  %v1588_v1 = vld [vmem:[%s2865_s11 + $0x8] sm:$0xff] }
 0x40a   : > { %v1213_v2 = vpop.permute.xlu1 %1212  ;;  %v1047_v3 = vpop.xlane.xlu0 %1046 }
 0x40b   : > { %2138 = vrcp.f32 %v1047_v3  ;;  %2004 = vmatpush3.msra.mxu0 %v1213_v2  ;;  %v1587_v2 = vld [vmem:[%s2865_s11] sm:$0xff] }
 0x40c   : > { %2013 = vmatprep.subr.mxu0 %v2302_v0  ;;  %v1910_v3 = vld [vmem:[%s2864_s10] ss:$0 sm:$0xff] }
 0x40e   : > { %v1137_v4 = vpop.permute.xlu0 %1136  ;;  %v1289_v8 = vpop.permute.xlu1 %1288 }
 0x40f   : > { %v2135_v6 = vpop.eup %2134  ;;  %1999 = vmatpush3.msra.mxu1 %v1137_v4 }
 0x410   : > { %2008 = vmatprep.subr.mxu1 %v2302_v0  ;;  %v1053_v7 = vmul.f32 %v2135_v6, %v2127_v54 }
 0x412   : > { %1057 = vst.msk [vmem:[%s2653_s28 + $0x8] sm:$0xff] %vm709_vm2, %v1053_v7  ;;  %2001 = vmatmul.mubr.msk.f32.vlgmr.msra.gmra.mxu1 %vm709_vm2, %v1053_v7 }
 0x413   : > { %2009 = vmatpush3.msra.mxu1 %v1289_v8  ;;  %2010 = vmatprep.mubr.msk.f32.mxu1 %vm2303_vm0, %v2302_v0 }
 0x414   : > { %v2137_v9 = vpop.eup %2136  ;;  %2024 = vmatprep.subr.mxu1 %v2302_v0 }
 0x415   : > { %v1054_v10 = vmul.f32 %v2137_v9, %v2129_v56  ;;  %v1908_v56 = vld [vmem:[%s2861_s7] ss:$0 sm:$0xff] }
 0x416   : > { %v1912_v9 = vld [vmem:[%s2866_s12] ss:$0 sm:$0xff] }
 0x417   : > { %1058 = vst.msk [vmem:[%s2653_s28 + $0x10] sm:$0xff] %vm709_vm2, %v1054_v10  ;;  %2006 = vmatmul.mubr.msk.f32.vlgmr.msra.gmra.mxu0 %vm709_vm2, %v1054_v10 }
 0x418   : > { %v2139_v11 = vpop.eup %2138  ;;  %2021 = vmatprep.mubr.msk.f32.mxu0 %vm2303_vm0, %v2302_v0  ;;  %2014 = vmatpush3.msra.mxu0 %v1384_v15 }
 0x419   : > { %v1055_v12 = vmul.f32 %v2139_v11, %v2131_v58  ;;  %2015 = vmatprep.subr.mxu0 %v2302_v0  ;;  %v1909_v58 = vld [vmem:[%s2862_s8] ss:$0 sm:$0xff] }
 0x41a   : > { %2016 = vmatpush3.msra.mxu0 %v1383_v16 }
 0x41b   : > { %1059 = vst.msk [vmem:[%s2653_s28 + $0x18] sm:$0xff] %vm709_vm2, %v1055_v12  ;;  %2011 = vmatmul.mubr.msk.f32.vlgmr.msra.gmra.mxu1 %vm709_vm2, %v1055_v12  ;;  %2017 = vmatprep.subr.mxu0 %v2302_v0 }
 0x41c   : > { %2032 = vmatprep.mubr.msk.f32.mxu1 %vm2303_vm0, %v2302_v0  ;;  %2018 = vmatpush3.msra.mxu0 %v1382_v17 }
 0x41d   : > { %2019 = vmatprep.subr.mxu0 %v2302_v0  ;;  %2025 = vmatpush3.msra.mxu1 %v1505_v43 }
 0x41e   : > { %2020 = vmatpush3.msra.mxu0 %v1381_v18  ;;  %2026 = vmatprep.subr.mxu1 %v2302_v0 }
 0x41f   : > { %2035 = vmatprep.subr.mxu0 %v2302_v0 }
 0x46a   : > { %v1132_v13 = vpop.f32.mrf.mxu0 }
 0x46c   : > { %v1997_v14 = vpop.f32.mrf.mxu0 }
 0x4d2   : > { %v1208_v19 = vpop.f32.mrf.mxu1 }
 0x4d3   : > { %1365 = vrot.lane.b32.xlu0 %v1208_v19, %s2309_s29 }
 0x4d4   : > { %v2002_v20 = vpop.f32.mrf.mxu1 }
 0x4d7   : > { %v1284_v21 = vpop.f32.mrf.mxu0 }
 0x4d8   : > { %1369 = vrot.lane.b32.xlu1 %v1284_v21, %s2310_s0  ;;  %s2911_s0 = sld [smem:[#allocation24_spill]] }
 0x4d9   : > { %v2007_v22 = vpop.f32.mrf.mxu0 }
 0x4db   : > { %v1360_v23 = vpop.f32.mrf.mxu1 }
 0x4dc   : > { %1373 = vrot.lane.b32.xlu0 %v1360_v23, %s2311_s19  ;;  %s601_s19 = scalar_lea.vmem %s2910_s1, %s1891_s20  ;;  %s2204_s20 = sshll.u32 %s2313_s15, 4  ;;  %s2205_s20 = int_to_ptr.vmem [resolvable:$false] %s2204_s20 }
 0x4dd   : > { %v2012_v24 = vpop.f32.mrf.mxu1  ;;  %v603_v45 = vld [vmem:[%s601_s19] sm:$0xff]  ;;  %s2206_s27 = scalar_lea.vmem %s2205_s20, 1024  ;;  %p2207_p2 = scmp.lt.s32.totalorder %s2783_s14, %s2205_s20 }
 0x4de   : > { %s2780_s19 = scalar_lea.hbm %s2911_s0, %s2884_s16  ;;  %p2208_p4 = scmp.lt.s32.totalorder %s2206_s27, %s2200_s26 }
 0x4e0   : > { %p2209_p5 = por %p2208_p4, %p2207_p2 }
 0x4e2   : > { %p2210_p9 = pnand %p2209_p5, %p2203_p10 }
 0x545   : > { %v1366_v25 = vpop.permute.xlu0 %1365 }
 0x546   : > { %v1376_v27 = vsel %vm709_vm2, %v1132_v13, %v1366_v25 }
 0x54a   : > { %v1370_v26 = vpop.permute.xlu1 %1369 }
 0x54b   : > { %v1378_v28 = vsel %vm1377_vm4, %v1376_v27, %v1370_v26 }
 0x54e   : > { %v1374_v29 = vpop.permute.xlu0 %1373 }
 0x54f   : > { %v1380_v30 = vsel %vm1379_vm5, %v1378_v28, %v1374_v29 }
 0x550   : > { %2022 = vmatmul.mubr.msk.f32.vlgmr.msra.gmra.mxu0 %vm618_vm1, %v1380_v30 }
 0x551   : > { %2051 = vmatprep.mubr.msk.f32.mxu0 %vm2303_vm0, %v2302_v0  ;;  %2036 = vmatpush3.msra.mxu0 %v1594_v47 }
 0x552   : > { %2037 = vmatprep.subr.mxu0 %v2302_v0 }
 0x553   : > { %2038 = vmatpush3.msra.mxu0 %v1593_v48 }
 0x554   : > { %2039 = vmatprep.subr.mxu0 %v2302_v0 }
 0x555   : > { %2040 = vmatpush3.msra.mxu0 %v1592_v49 }
 0x556   : > { %2041 = vmatprep.subr.mxu0 %v2302_v0 }
 0x557   : > { %2042 = vmatpush3.msra.mxu0 %v1591_v50 }
 0x558   : > { %2043 = vmatprep.subr.mxu0 %v2302_v0 }
 0x559   : > { %2044 = vmatpush3.msra.mxu0 %v1590_v51 }
 0x55a   : > { %2045 = vmatprep.subr.mxu0 %v2302_v0 }
 0x55b   : > { %2046 = vmatpush3.msra.mxu0 %v1589_v63 }
 0x55c   : > { %2047 = vmatprep.subr.mxu0 %v2302_v0 }
 0x55d   : > { %2048 = vmatpush3.msra.mxu0 %v1588_v1 }
 0x55e   : > { %2049 = vmatprep.subr.mxu0 %v2302_v0 }
 0x55f   : > { %2050 = vmatpush3.msra.mxu0 %v1587_v2 }
 0x610   : > { %v1461_v32 = vpop.f32.mrf.mxu0 }
 0x611   : > { %v1462_v33 = vadd.f32 %v1906_v31, %v1461_v32 }
 0x612   : > { %v2023_v34 = vpop.f32.mrf.mxu0 }
 0x613   : > { %v1465_v35 = vadd.f32 %v1462_v33, %v2585_v5  ;;  %v1504_v5 = vld [vmem:[%s2863_s9 + $0x10] sm:$0xff] }
 0x614   : > { %2027 = vmatpush3.msra.mxu1 %v1504_v5 }
 0x615   : > { %v1468_v36 = vsel %vm618_vm1, %v1465_v35, 0.0  ;;  %2028 = vmatprep.subr.mxu1 %v2302_v0 }
 0x616   : > { %1469 = vadd.xlane.f32.xlu1 %v1468_v36  ;;  %2029 = vmatpush3.msra.mxu1 %v1503_v44 }
 0x617   : > { %2030 = vmatprep.subr.mxu1 %v2302_v0 }
 0x618   : > { %2031 = vmatpush3.msra.mxu1 %v1502_v46 }
 0x69f   : > { %v1470_v38 = vpop.xlane.xlu1 %1469 }
 0x6a0   : > { %v1472_v39 = vmul.f32 0.03125, %v1470_v38 }
 0x6a2   : > { %v1473_v40 = vsub.f32 %v1465_v35, %v1472_v39 }
 0x6a4   : > { %v1474_v41 = vmul.f32 %v1473_v40, %v1473_v40 }
 0x6a6   : > { %v1475_v42 = vsel %vm618_vm1, %v1474_v41, 0.0 }
 0x6a7   : > { %1476 = vadd.xlane.f32.xlu0 %v1475_v42 }
 0x6bd   : > { %1498 = vperm.xlu0 %2123, %v603_v45  }
 0x730   : > { %v1477_v52 = vpop.xlane.xlu0 %1476 }
 0x731   : > { %v1478_v53 = vmul.f32 0.03125, %v1477_v52 }
 0x733   : > { %v1479_v54 = vadd.f32 1e-05, %v1478_v53 }
 0x735   : > { %2140 = vrsqrt.f32 %v1479_v54 }
 0x738   : > { %v2751_v60 = vpop.permute.xlu0 %1498 }
 0x742   : > { %v2141_v55 = vpop.eup %2140 }
 0x743   : > { %v1481_v57 = vmul.f32 %v2141_v55, %v1473_v40 }
 0x745   : > { %v1488_v59 = vmul.f32 %v1908_v56, %v1481_v57 }
 0x747   : > { %v1495_v61 = vadd.f32 %v1909_v58, %v1488_v59 }
 0x749   : > { %v1501_v62 = vmul.f32 %v2751_v60, %v1495_v61 }
 0x74b   : > { %2033 = vmatmul.mubr.msk.f32.vlgmr.msra.gmra.mxu1 %vm618_vm1, %v1501_v62 }
 0x80b   : > { %v1582_v4 = vpop.f32.mrf.mxu1 }
 0x80c   : > { %v1583_v6 = vadd.f32 %v1910_v3, %v1582_v4 }
 0x80d   : > { %v2034_v7 = vpop.f32.mrf.mxu1 }
 0x80e   : > { %v1586_v8 = vmax.f32 %v1583_v6, 0.0 }
 0x810   : > { %2052 = vmatmul.mubr.msk.f32.vlgmr.msra.gmra.mxu0 %vm1602_vm6, %v1586_v8 }
 0x8d0   : > { %v1672_v10 = vpop.f32.mrf.mxu0 }
 0x8d1   : > { %v1673_v0 = vadd.f32 %v1912_v9, %v1672_v10 }
 0x8d2   : > { %v2053_v11 = vpop.f32.mrf.mxu0 }
 0x8d3   : > { %v1676_v12 = vadd.f32 %v1673_v0, %v1501_v62 }
 0x8d5   : > { %v1679_v13 = vsel %vm618_vm1, %v1676_v12, 0.0 }
 0x8d6   : > { %1680 = vadd.xlane.f32.xlu1 %v1679_v13 }
 0x95f   : > { %v1681_v14 = vpop.xlane.xlu1 %1680 }
 0x960   : > { %v1682_v15 = vmul.f32 0.03125, %v1681_v14 }
 0x962   : > { %v1683_v16 = vsub.f32 %v1676_v12, %v1682_v15 }
 0x964   : > { %v1684_v17 = vmul.f32 %v1683_v16, %v1683_v16 }
 0x966   : > { %v1685_v18 = vsel %vm618_vm1, %v1684_v17, 0.0 }
 0x967   : > { %1686 = vadd.xlane.f32.xlu1 %v1685_v18 }
 0x968   : > { %2213 = shalt.err (!%p2210_p9)
}
 0x969   : > { %s2214_s28 = scalar_lea.hbm %s2780_s19, 512  ;;  %s2218_s15 = scalar_lea.hbm %s2911_s0, 1024 }
 0x96a   : > { %p2215_p0 = scmp.ne.s32.totalorder %s2780_s19, %s2214_s28  ;;  %p2219_p1 = scmp.lt.s32.totalorder %s2780_s19, %s2911_s0 }
 0x96b   : > { %p2220_p6 = scmp.lt.s32.totalorder %s2218_s15, %s2214_s28 }
 0x96c   : > { %p2216_p11 = pnand %p2215_p0, %p2912_p7 }
 0x96d   : > { %p2221_p13 = por %p2220_p6, %p2219_p1 }
 0x96e   : > { %p2217_p12 = pneg %p2216_p11 }
 0x970   : > { %p2222_p3 = pnand %p2221_p13, %p2217_p12 }
 0x972   : > { %2225 = shalt.err (!%p2222_p3)
}
 0x973   : > { %s2314_s26 = smov 128   ;;  %s2315_s20 = smov 256  }
 0x974   : > { %s2913_s27 = scalar_lea.sflag [#allocation9], %s2548_s21  ;;  %s2914_s28 = sld [smem:[#allocation21_spill]] }
 0x975   : > { %2059 = dma.vmem_to_hbm [thread:$0]  (%p2912_p7), %s2783_s14, 512, %s2780_s19, %s2913_s27, %s2314_s26, %s2315_s20, %s2309_s29  }
 0x976   : > { %s2915_s15 = sld [smem:[#allocation22_spill]]  ;;  %s590_s0 = scalar_lea.vmem [#allocation7], %s2551_s30 }
 0x977   : > { %s1727_s1 = sshll.u32 %s590_s0, 4  ;;  %s2916_s29 = sshll.u32 %s2423_s25, 7  ;;  %s1728_s1 = int_to_ptr.vmem [resolvable:$true] %s1727_s1 }
 0x978   : > { %s2917_s26 = sld [smem:[#allocation23_spill]]  ;;  %s1709_s27 = scalar_lea.sflag [#allocation4], %s2548_s21 }
 0x979   : > { %s2226_s16 = scalar_lea.vmem %s1728_s1, 128  ;;  %s2316_s17 = smov [#allocation7]  }
 0x97a   : > { %v1914_v23 = vld [vmem:[%s2914_s28] ss:$0 sm:$0xff]  ;;  %p2227_p8 = scmp.ne.s32.totalorder %s1728_s1, %s2226_s16  ;;  %s2230_s30 = sshll.u32 %s2316_s17, 4  ;;  %s2231_s30 = int_to_ptr.vmem [resolvable:$false] %s2230_s30 }
 0x97b   : > { %s2232_s28 = scalar_lea.vmem %s2231_s30, 256  ;;  %p2233_p4 = scmp.lt.s32.totalorder %s1728_s1, %s2231_s30 }
 0x97c   : > { %v1915_v25 = vld [vmem:[%s2915_s15] ss:$0 sm:$0xff]  ;;  %p2228_p10 = pnand %p2227_p8, %p2912_p7  ;;  %p2234_p5 = scmp.lt.s32.totalorder %s2232_s28, %s2226_s16 }
 0x97e   : > { %s1725_s20 = scalar_lea.hbm %s2917_s26, %s2916_s29  ;;  %p2229_p2 = pneg %p2228_p10 }
 0x97f   : > { %p2235_p9 = por %p2234_p5, %p2233_p4 }
 0x981   : > { %p2236_p0 = pnand %p2235_p9, %p2229_p2 }
 0x9f0   : > { %v1687_v19 = vpop.xlane.xlu1 %1686 }
 0x9f1   : > { %v1688_v20 = vmul.f32 0.03125, %v1687_v19 }
 0x9f3   : > { %v1689_v21 = vadd.f32 1e-05, %v1688_v20 }
 0x9f5   : > { %2142 = vrsqrt.f32 %v1689_v21 }
 0xa02   : > { %v2143_v22 = vpop.eup %2142 }
 0xa03   : > { %v1691_v24 = vmul.f32 %v2143_v22, %v1683_v16 }
 0xa05   : > { %v1698_v26 = vmul.f32 %v1914_v23, %v1691_v24 }
 0xa07   : > { %v1705_v27 = vadd.f32 %v1915_v25, %v1698_v26 }
 0xa09   : > { %v1706_v28 = vmul.f32 %v1705_v27, %v2751_v60 }
 0xa0b   : > { %1707 = vst.msk [vmem:[%s590_s0] sm:$0xff] %vm618_vm1, %v1706_v28 }
 0xa0c   : > { %2239 = shalt.err (!%p2236_p0)
}
 0xa0d   : > { %s2240_s25 = scalar_lea.hbm %s1725_s20, 128  ;;  %s2244_s13 = scalar_lea.hbm %s2917_s26, 256 }
 0xa0e   : > { %p2241_p11 = scmp.ne.s32.totalorder %s1725_s20, %s2240_s25  ;;  %p2245_p6 = scmp.lt.s32.totalorder %s1725_s20, %s2917_s26 }
 0xa0f   : > { %p2246_p13 = scmp.lt.s32.totalorder %s2244_s13, %s2240_s25 }
 0xa10   : > { %p2242_p12 = pnand %p2241_p11, %p2912_p7 }
 0xa11   : > { %p2247_p3 = por %p2246_p13, %p2245_p6 }
 0xa12   : > { %p2243_p1 = pneg %p2242_p12 }
 0xa14   : > { %p2248_p8 = pnand %p2247_p3, %p2243_p1 }
 0xa16   : > { %2251 = shalt.err (!%p2248_p8)
}
 0xa17   : > { %2058 = dma.vmem_to_hbm [thread:$0]  (%p2912_p7), %s1728_s1, 128, %s1725_s20, %s1709_s27  }
 0xa18 PF: > { %s2918_s29 = sld [smem:[#allocation14_spill]]  ;;  %p2921_p2 = scmp.ge.s32.totalorder %s2298_s24, 2 }
 0xa19   : > { %s2919_s19 = sld [smem:[#allocation18_spill]] }
 0xa1e   : > { %s1754_s14 = sand.u32 1, %s2918_s29  }
 0xa1f   : > { %p2920_p10 = scmp.ne.s32.totalorder %s2919_s19, 0  ;;  %s1755_s16 = scalar_lea.sflag [#allocation4], %s1754_s14 }
 0xa21   : > { %p2070_p4 = pnand %p2921_p2, %p2920_p10 }
 0xa23   : > { %p2071_p5 = pneg %p2070_p4 }
 0xa25   : > { %2277 = dma.done.wait (%p2071_p5), %s1755_s16, 128  }
 0xa26   : > { %2279 = vsyncadd (%p2071_p5), %s1755_s16, 4294967168  ;;  %s1764_s17 = scalar_lea.sflag [#allocation9], %s1754_s14 }
 0xa27   : > { %2281 = dma.done.wait (%p2071_p5), %s1764_s17, 512  }
 0xa28   : > { %2283 = vsyncadd (%p2071_p5), %s1764_s17, 4294966784  ;;  %s2922_s24 = sld [smem:[#allocation16_spill]]  ;;  %s2925_s21 = smov %s2290_s22 }
 0xa29   : > { %s2923_s30 = sld [smem:[#allocation15_spill]] }
 0xa2a   : > { %s2924_s23 = sld [smem:[#allocation17_spill]] }
 0xa2e   : > { %p36_p7 = scmp.ge.s32.totalorder %s2922_s24, 4  }
 0xa2f   : > { %s2926_s22 = smov %s2923_s30 }
 0xa30   :  { %38 = sbr.rel (!%p36_p7) target bundleno = 16 (0x10), region = 158 }
 0xa35   :  { %1769 = vsyncpa [#allocation3], 1 }
 0xa36   :  { %1771 = vsyncpa [#allocation3 + $0x1], 1 }
 0xa37   :  { %1772 = vsyncpa [#allocation6], 1 }
 0xa38   :  { %1774 = vsyncpa [#allocation6 + $0x1], 1 }
 0xa39   :  { %1775 = vsyncpa [#allocation4], 1 }
 0xa3a   :  { %1777 = vsyncpa [#allocation4 + $0x1], 1 }
 0xa3b   :  { %1778 = vsyncpa [#allocation9], 1 }
 0xa3c   :  { %1780 = vsyncpa [#allocation9 + $0x1], 1 }

</bundles_post_ra>
